<compile_context>
chip_gen: v7x
topology: tpu7x:2x2x1
jax: 0.10.0
libtpu: 0.0.40
codegen_flags: <defaults>
</compile_context>

<pallas_src>
import functools

import jax
import jax.numpy as jnp
from jax.experimental import pallas as pl
from jax.experimental.pallas import tpu as pltpu


def _round_up(v, m):
    return (v + m - 1) // m * m


def _classifier_kernel(x_ref, we_ref, be_ref, wc_ref, bc_ref, o_ref):
    """Fused encoder-linear + classifier-linear (one M tile per grid step).

    x_ref  : (TM, Fp)      f32   flattened input tile
    we_ref : (Ep, Fp)      bf16  encoder weight, torch (out, in) layout
    be_ref : (1,  Ep)      f32   encoder bias
    wc_ref : (Op, Ep)      bf16  classifier weight, torch (out, in) layout
    bc_ref : (1,  Op)      f32   classifier bias
    o_ref  : (TM, Op)      f32   logits tile (padded lanes are zero)
    """
    x = x_ref[...].astype(jnp.bfloat16)

    # encoder stand-in: h = x @ We.T + be   (contract last dims -> no transpose)
    h = jax.lax.dot_general(
        x, we_ref[...],
        dimension_numbers=(((1,), (1,)), ((), ())),
        preferred_element_type=jnp.float32,
    ) + be_ref[...]

    # classifier head: y = h @ Wc.T + bc    (== torch nn.Linear)
    y = jax.lax.dot_general(
        h.astype(jnp.bfloat16), wc_ref[...],
        dimension_numbers=(((1,), (1,)), ((), ())),
        preferred_element_type=jnp.float32,
    ) + bc_ref[...]

    o_ref[...] = y.astype(o_ref.dtype)


@functools.partial(jax.jit, static_argnames=("tm",))
def classifier_forward(x_nchw, w_enc, b_enc, w_cls, b_cls, *, tm=256):
    """x_nchw: (N, C, H, W) f32.
    w_enc: (E, F) torch layout (out, in); b_enc: (E,)
    w_cls: (O, E) torch layout (out, in); b_cls: (O,)
    Returns logits (N, O) f32.
    """
    n, c, h, w = x_nchw.shape
    f = c * h * w
    e = w_enc.shape[0]
    o = w_cls.shape[0]

    # Lane/sublane-dense padded sizes (done here for a self-contained script;
    # in a real model pad + bf16-cast the params once at init time).
    f_p = _round_up(f, 128)
    e_p = _round_up(e, 128)
    o_p = _round_up(o, 128)
    tm = min(tm, _round_up(n, 8))          # M tile, multiple of 8 sublanes
    n_p = _round_up(n, tm)

    x_flat = x_nchw.reshape(n, f)           # same as torch .view(N, -1)
    x_p = jnp.zeros((n_p, f_p), x_nchw.dtype).at[:n, :f].set(x_flat)
    we_p = jnp.zeros((e_p, f_p), jnp.bfloat16).at[:e, :f].set(
        w_enc.astype(jnp.bfloat16))
    wc_p = jnp.zeros((o_p, e_p), jnp.bfloat16).at[:o, :e].set(
        w_cls.astype(jnp.bfloat16))
    be_p = jnp.zeros((1, e_p), jnp.float32).at[0, :e].set(b_enc)
    bc_p = jnp.zeros((1, o_p), jnp.float32).at[0, :o].set(b_cls)

    grid = (n_p // tm,)

    out_p = pl.pallas_call(
        _classifier_kernel,
        out_shape=jax.ShapeDtypeStruct((n_p, o_p), jnp.float32),
        grid=grid,
        in_specs=[
            pl.BlockSpec((tm, f_p), lambda i: (i, 0)),      # x tile per M step
            pl.BlockSpec((e_p, f_p), lambda i: (0, 0)),     # We resident
            pl.BlockSpec((1, e_p), lambda i: (0, 0)),       # be resident
            pl.BlockSpec((o_p, e_p), lambda i: (0, 0)),     # Wc resident
            pl.BlockSpec((1, o_p), lambda i: (0, 0)),       # bc resident
        ],
        out_specs=pl.BlockSpec((tm, o_p), lambda i: (i, 0)),
        compiler_params=pltpu.CompilerParams(
            dimension_semantics=("parallel",),              # M tiles -> both TCs on v7x
        ),
        cost_estimate=pl.CostEstimate(
            flops=2 * n_p * f_p * e_p + 2 * n_p * e_p * o_p,
            transcendentals=0,
            bytes_accessed=(x_p.size * 4 + we_p.size * 2 + wc_p.size * 2
                            + be_p.size * 4 + bc_p.size * 4 + n_p * o_p * 4),
        ),
    )(x_p, we_p, be_p, wc_p, bc_p)

    return out_p[:n, :o]


if __name__ == "__main__":
    # Small deterministic shapes consistent with the module:
    #   x: (batch=2, channels=4, spatial=16x16) -> flattened F = 1024
    #   encoded_space_dim = 32, OUTPUTS_a = 10
    N, C, H, W = 2, 4, 16, 16
    F = C * H * W
    E = 32       # encoded_space_dim
    O = 10       # OUTPUTS_a

    key = jax.random.PRNGKey(0)
    kx, kwe, kbe, kwc, kbc = jax.random.split(key, 5)

    x = jax.random.normal(kx, (N, C, H, W), dtype=jnp.float32)
    # torch nn.Linear weight layout: (out_features, in_features)
    w_enc = jax.random.normal(kwe, (E, F), dtype=jnp.float32) * 0.02
    b_enc = jax.random.normal(kbe, (E,), dtype=jnp.float32) * 0.02
    w_cls = jax.random.normal(kwc, (O, E), dtype=jnp.float32) * 0.1
    b_cls = jax.random.normal(kbc, (O,), dtype=jnp.float32) * 0.1

    logits = classifier_forward(x, w_enc, b_enc, w_cls, b_cls)
    jax.block_until_ready(logits)
    assert logits.shape == (N, O)

    x_flat = x.reshape(N, F)

    # bf16-matched reference (same arithmetic as the kernel) — tight tolerance.
    h_ref = jnp.dot(x_flat.astype(jnp.bfloat16), w_enc.astype(jnp.bfloat16).T,
                    preferred_element_type=jnp.float32) + b_enc
    ref_bf16 = jnp.dot(h_ref.astype(jnp.bfloat16), w_cls.astype(jnp.bfloat16).T,
                       preferred_element_type=jnp.float32) + b_cls
    assert jnp.allclose(logits, ref_bf16, atol=2e-3, rtol=2e-3)

    # Full-f32 reference — loose tolerance (bf16 MXU inputs, f32 accumulation).
    ref_f32 = (x_flat @ w_enc.T + b_enc) @ w_cls.T + b_cls
    assert jnp.allclose(logits, ref_f32, atol=5e-2, rtol=5e-2)

    print("KERNEL_OK")
</pallas_src>

<mosaic_0001>
module attributes {stable_mosaic.version = 11 : i64} {
  func.func @_classifier_kernel(%arg0: i32, %arg1: memref<8x1024xf32, #tpu.memory_space<vmem>>, %arg2: memref<128x1024xbf16, #tpu.memory_space<vmem>>, %arg3: memref<1x128xf32, #tpu.memory_space<vmem>>, %arg4: memref<128x128xbf16, #tpu.memory_space<vmem>>, %arg5: memref<1x128xf32, #tpu.memory_space<vmem>>, %arg6: memref<8x128xf32, #tpu.memory_space<vmem>>) attributes {dimension_semantics = [#tpu.dimension_semantics<parallel>], iteration_bounds = array<i64: 1>, scalar_prefetch = 0 : i64, scratch_operands = 0 : i64, tpu.core_type = #tpu.core_type<tc>, window_params = [{transform_indices = @transform_0, window_bounds = array<i64: 8, 1024>}, {pipeline_mode = #tpu.pipeline_mode<synchronous>, transform_indices = @transform_1, window_bounds = array<i64: 128, 1024>}, {pipeline_mode = #tpu.pipeline_mode<synchronous>, transform_indices = @transform_2, window_bounds = array<i64: 1, 128>}, {pipeline_mode = #tpu.pipeline_mode<synchronous>, transform_indices = @transform_3, window_bounds = array<i64: 128, 128>}, {pipeline_mode = #tpu.pipeline_mode<synchronous>, transform_indices = @transform_4, window_bounds = array<i64: 1, 128>}, {transform_indices = @transform_5, window_bounds = array<i64: 8, 128>}]} {
    %c0 = arith.constant 0 : index
    %c0_0 = arith.constant 0 : index
    %0 = vector.load %arg1[%c0, %c0_0] : memref<8x1024xf32, #tpu.memory_space<vmem>>, vector<8x1024xf32>
    %1 = arith.truncf %0 : vector<8x1024xf32> to vector<8x1024xbf16>
    %c0_1 = arith.constant 0 : index
    %c0_2 = arith.constant 0 : index
    %2 = vector.load %arg2[%c0_1, %c0_2] : memref<128x1024xbf16, #tpu.memory_space<vmem>>, vector<128x1024xbf16>
    %cst = arith.constant dense<0.000000e+00> : vector<8x128xf32>
    %3 = tpu.matmul %1, %2, %cst {dimension_numbers = #tpu.dot_dimension_numbers<[1], [1], [0], [0], [0, 0, 1, 0], [], []>} : vector<8x1024xbf16>, vector<128x1024xbf16>, vector<8x128xf32> -> vector<8x128xf32>
    %c0_3 = arith.constant 0 : index
    %c0_4 = arith.constant 0 : index
    %4 = vector.load %arg3[%c0_3, %c0_4] : memref<1x128xf32, #tpu.memory_space<vmem>>, vector<1x128xf32>
    %5 = vector.broadcast %4 : vector<1x128xf32> to vector<8x128xf32>
    %6 = arith.addf %3, %5 : vector<8x128xf32>
    %7 = arith.truncf %6 : vector<8x128xf32> to vector<8x128xbf16>
    %c0_5 = arith.constant 0 : index
    %c0_6 = arith.constant 0 : index
    %8 = vector.load %arg4[%c0_5, %c0_6] : memref<128x128xbf16, #tpu.memory_space<vmem>>, vector<128x128xbf16>
    %cst_7 = arith.constant dense<0.000000e+00> : vector<8x128xf32>
    %9 = tpu.matmul %7, %8, %cst_7 {dimension_numbers = #tpu.dot_dimension_numbers<[1], [1], [0], [0], [0, 0, 1, 0], [], []>} : vector<8x128xbf16>, vector<128x128xbf16>, vector<8x128xf32> -> vector<8x128xf32>
    %c0_8 = arith.constant 0 : index
    %c0_9 = arith.constant 0 : index
    %10 = vector.load %arg5[%c0_8, %c0_9] : memref<1x128xf32, #tpu.memory_space<vmem>>, vector<1x128xf32>
    %11 = vector.broadcast %10 : vector<1x128xf32> to vector<8x128xf32>
    %12 = arith.addf %9, %11 : vector<8x128xf32>
    %c0_10 = arith.constant 0 : index
    %c0_11 = arith.constant 0 : index
    %13 = vector.load %arg6[%c0_10, %c0_11] : memref<8x128xf32, #tpu.memory_space<vmem>>, vector<8x128xf32>
    tpu.vector_store %arg6[%c0_10, %c0_11], %12 {strides = array<i32>} : memref<8x128xf32, #tpu.memory_space<vmem>>, vector<8x128xf32>,
    return
  }
  func.func @transform_0(%arg0: i32) -> (i32, i32) {
    %c0_i32 = arith.constant 0 : i32
    %c0_i32_0 = arith.constant 0 : i32
    return %arg0, %c0_i32 : i32, i32
  }
  func.func @transform_1(%arg0: i32) -> (i32, i32) {
    %c0_i32 = arith.constant 0 : i32
    %c0_i32_0 = arith.constant 0 : i32
    %c0_i32_1 = arith.constant 0 : i32
    return %c0_i32, %c0_i32_0 : i32, i32
  }
  func.func @transform_2(%arg0: i32) -> (i32, i32) {
    %c0_i32 = arith.constant 0 : i32
    %c0_i32_0 = arith.constant 0 : i32
    %c0_i32_1 = arith.constant 0 : i32
    return %c0_i32, %c0_i32_0 : i32, i32
  }
  func.func @transform_3(%arg0: i32) -> (i32, i32) {
    %c0_i32 = arith.constant 0 : i32
    %c0_i32_0 = arith.constant 0 : i32
    %c0_i32_1 = arith.constant 0 : i32
    return %c0_i32, %c0_i32_0 : i32, i32
  }
  func.func @transform_4(%arg0: i32) -> (i32, i32) {
    %c0_i32 = arith.constant 0 : i32
    %c0_i32_0 = arith.constant 0 : i32
    %c0_i32_1 = arith.constant 0 : i32
    return %c0_i32, %c0_i32_0 : i32, i32
  }
  func.func @transform_5(%arg0: i32) -> (i32, i32) {
    %c0_i32 = arith.constant 0 : i32
    %c0_i32_0 = arith.constant 0 : i32
    return %arg0, %c0_i32 : i32, i32
  }
}

</mosaic_0001>

<bundles_post_ra>
// kernel: classifier_forward.1
= control target key start
LH: loop header
LB: loop body
LE: loop exit
PB: predicated region body
PF: predicated region fallthrough
CT: control target
= control target key end

     0   :  { %vm829_vm0 = vmmov 0   ;;  %s1118_s1 = inlined_call_operand.vmem [shape: bf16[128,1024], index: 1, kind: input, shape index: {}]   ;;  %s1119_s0 = inlined_call_operand.vmem [shape: f32[8,1024], index: 0, kind: input, shape index: {}]   ;;  %s1120_s3 = inlined_call_operand.vmem [shape: bf16[128,128], index: 3, kind: input, shape index: {}]   ;;  %s1121_s2 = inlined_call_operand.vmem [shape: f32[1,128], index: 2, kind: input, shape index: {}]   ;;  %s1122_s4 = inlined_call_operand.vmem [shape: f32[1,128], index: 4, kind: input, shape index: {}]   ;;  %s1123_s5 = inlined_call_operand.vmem [shape: f32[8,128], index: 5, kind: output, shape index: {}]  }
   0x1   :  { %v38_v0 = vld [vmem:[%s1118_s1 + $0x8] sm:$0xff]  ;;  %v24_v7 = vld [vmem:[%s1119_s0 + $0x18] sm:$0xff]  ;;  %v37_v13 = vld [vmem:[%s1118_s1] sm:$0xff] }
   0x2   :  { %v42_v1 = vld [vmem:[%s1118_s1 + $0x28] sm:$0xff]  ;;  %v32_v10 = vpack.c.bf16 %v24_v7, %v24_v7  ;;  %v41_v14 = vld [vmem:[%s1118_s1 + $0x20] sm:$0xff]  ;;  %v39_v60 = vld [vmem:[%s1118_s1 + $0x10] sm:$0xff] }
   0x3   :  { %v46_v2 = vld [vmem:[%s1118_s1 + $0x48] sm:$0xff]  ;;  %v709_v3 = vcombine.high %v38_v0, %v42_v1  ;;  %v708_v4 = vcombine.low %v38_v0, %v42_v1  ;;  %v707_v15 = vcombine.high %v37_v13, %v41_v14  ;;  %v706_v16 = vcombine.low %v37_v13, %v41_v14  ;;  %v45_v17 = vld [vmem:[%s1118_s1 + $0x40] sm:$0xff]  ;;  %v43_v61 = vld [vmem:[%s1118_s1 + $0x30] sm:$0xff] }
   0x4   :  { %v50_v5 = vld [vmem:[%s1118_s1 + $0x68] sm:$0xff]  ;;  %500 = vmatprep.mubr.bf16.mxu0 %v32_v10  ;;  %v49_v18 = vld [vmem:[%s1118_s1 + $0x60] sm:$0xff]  ;;  %v711_v63 = vcombine.high %v39_v60, %v43_v61 }
   0x5   :  { %v717_v6 = vcombine.high %v46_v2, %v50_v5  ;;  %468 = vmatprep.subr.bf16.mxu0 %v709_v3  ;;  %v54_v8 = vld [vmem:[%s1118_s1 + $0x88] sm:$0xff]  ;;  %v716_v11 = vcombine.low %v46_v2, %v50_v5  ;;  %428 = vmatprep.subr.bf16.mxu1 %v707_v15  ;;  %v715_v21 = vcombine.high %v45_v17, %v49_v18  ;;  %v53_v24 = vld [vmem:[%s1118_s1 + $0x80] sm:$0xff]  ;;  %v23_v5 = vld [vmem:[%s1119_s0 + $0x10] sm:$0xff] }
   0x6   :  { %469 = vmatpush1.bf16.xpose.msra.mxu0 %v708_v4  ;;  %v58_v9 = vld [vmem:[%s1118_s1 + $0xa8] sm:$0xff]  ;;  %429 = vmatpush1.bf16.xpose.msra.mxu1 %v706_v16  ;;  %v57_v25 = vld [vmem:[%s1118_s1 + $0xa0] sm:$0xff]  ;;  %v714_v26 = vcombine.low %v45_v17, %v49_v18  ;;  %v31_v10 = vpack.c.bf16 %v23_v5, %v23_v5  ;;  %v55_v15 = vld [vmem:[%s1118_s1 + $0x90] sm:$0xff] }
   0x7   :  { %470 = vmatprep.subr.bf16.mxu0 %v717_v6  ;;  %v725_v12 = vcombine.high %v54_v8, %v58_v9  ;;  %v62_v19 = vld [vmem:[%s1118_s1 + $0xc8] sm:$0xff]  ;;  %v724_v22 = vcombine.low %v54_v8, %v58_v9  ;;  %430 = vmatprep.subr.bf16.mxu1 %v715_v21  ;;  %v723_v27 = vcombine.high %v53_v24, %v57_v25  ;;  %v61_v32 = vld [vmem:[%s1118_s1 + $0xc0] sm:$0xff]  ;;  %v47_v8 = vld [vmem:[%s1118_s1 + $0x50] sm:$0xff] }
   0x8   :  { %v66_v20 = vld [vmem:[%s1118_s1 + $0xe8] sm:$0xff]  ;;  %v65_v33 = vld [vmem:[%s1118_s1 + $0xe0] sm:$0xff]  ;;  %v722_v34 = vcombine.low %v53_v24, %v57_v25  ;;  %v51_v9 = vld [vmem:[%s1118_s1 + $0x70] sm:$0xff] }
   0x9   :  { %v733_v23 = vcombine.high %v62_v19, %v66_v20  ;;  %v70_v28 = vld [vmem:[%s1118_s1 + $0x108] sm:$0xff]  ;;  %v732_v30 = vcombine.low %v62_v19, %v66_v20  ;;  %v731_v35 = vcombine.high %v61_v32, %v65_v33  ;;  %v69_v40 = vld [vmem:[%s1118_s1 + $0x100] sm:$0xff]  ;;  %v730_v42 = vcombine.low %v61_v32, %v65_v33  ;;  %v59_v16 = vld [vmem:[%s1118_s1 + $0xb0] sm:$0xff] }
   0xa   :  { %v74_v29 = vld [vmem:[%s1118_s1 + $0x128] sm:$0xff]  ;;  %v73_v41 = vld [vmem:[%s1118_s1 + $0x120] sm:$0xff]  ;;  %v719_v13 = vcombine.high %v47_v8, %v51_v9  ;;  %v718_v18 = vcombine.low %v47_v8, %v51_v9  ;;  %v828_v19 = vmov 0.0   ;;  %v727_v20 = vcombine.high %v55_v15, %v59_v16  ;;  %v67_v24 = vld [vmem:[%s1118_s1 + $0xf0] sm:$0xff] }
   0xb   :  { %v741_v31 = vcombine.high %v70_v28, %v74_v29  ;;  %v78_v36 = vld [vmem:[%s1118_s1 + $0x148] sm:$0xff]  ;;  %v740_v38 = vcombine.low %v70_v28, %v74_v29  ;;  %v739_v43 = vcombine.high %v69_v40, %v73_v41  ;;  %v77_v48 = vld [vmem:[%s1118_s1 + $0x140] sm:$0xff]  ;;  %v738_v50 = vcombine.low %v69_v40, %v73_v41  ;;  %v71_v28 = vld [vmem:[%s1118_s1 + $0x110] sm:$0xff] }
   0xc   :  { %v82_v37 = vld [vmem:[%s1118_s1 + $0x168] sm:$0xff]  ;;  %v81_v49 = vld [vmem:[%s1118_s1 + $0x160] sm:$0xff]  ;;  %v726_v25 = vcombine.low %v55_v15, %v59_v16  ;;  %v75_v29 = vld [vmem:[%s1118_s1 + $0x130] sm:$0xff] }
   0xd   :  { %v749_v39 = vcombine.high %v78_v36, %v82_v37  ;;  %v86_v44 = vld [vmem:[%s1118_s1 + $0x188] sm:$0xff]  ;;  %v748_v46 = vcombine.low %v78_v36, %v82_v37  ;;  %v747_v51 = vcombine.high %v77_v48, %v81_v49  ;;  %v85_v56 = vld [vmem:[%s1118_s1 + $0x180] sm:$0xff]  ;;  %v746_v58 = vcombine.low %v77_v48, %v81_v49  ;;  %v822_v32 = vld [vmem:[%s1120_s3 + $0x10] sm:$0xff]  }
   0xe   :  { %471 = vmatpush1.bf16.xpose.msra.mxu0 %v716_v11  ;;  %431 = vmatpush1.bf16.xpose.msra.mxu1 %v714_v26  ;;  %v90_v45 = vld [vmem:[%s1118_s1 + $0x1a8] sm:$0xff]  ;;  %v89_v57 = vld [vmem:[%s1118_s1 + $0x1a0] sm:$0xff]  ;;  %v710_v11 = vcombine.low %v39_v60, %v43_v61  ;;  %v79_v33 = vld [vmem:[%s1118_s1 + $0x150] sm:$0xff] }
   0xf   :  { %472 = vmatprep.subr.bf16.mxu0 %v725_v12  ;;  %432 = vmatprep.subr.bf16.mxu1 %v723_v27  ;;  %v757_v47 = vcombine.high %v86_v44, %v90_v45  ;;  %v94_v52 = vld [vmem:[%s1118_s1 + $0x1c8] sm:$0xff]  ;;  %v756_v54 = vcombine.low %v86_v44, %v90_v45  ;;  %v755_v59 = vcombine.high %v85_v56, %v89_v57  ;;  %v93_v0 = vld [vmem:[%s1118_s1 + $0x1c0] sm:$0xff]  ;;  %v823_v37 = vld [vmem:[%s1120_s3 + $0x18] sm:$0xff]  }
  0x10   :  { %v98_v53 = vld [vmem:[%s1118_s1 + $0x1e8] sm:$0xff]  ;;  %v97_v1 = vld [vmem:[%s1118_s1 + $0x1e0] sm:$0xff]  ;;  %v754_v3 = vcombine.low %v85_v56, %v89_v57  ;;  %v99_v44 = vld [vmem:[%s1118_s1 + $0x1f0] sm:$0xff] }
  0x11   :  { %v765_v55 = vcombine.high %v94_v52, %v98_v53  ;;  %v764_v62 = vcombine.low %v94_v52, %v98_v53  ;;  %v22_v2 = vld [vmem:[%s1119_s0 + $0x8] sm:$0xff]  ;;  %v763_v6 = vcombine.high %v93_v0, %v97_v1  ;;  %v762_v14 = vcombine.low %v93_v0, %v97_v1  ;;  %v21_v17 = vld [vmem:[%s1119_s0] sm:$0xff]  ;;  %v40_v48 = vld [vmem:[%s1118_s1 + $0x18] sm:$0xff] }
  0x12   :  { %v30_v4 = vpack.c.bf16 %v22_v2, %v22_v2  ;;  %v26_v7 = vld [vmem:[%s1119_s0 + $0x28] sm:$0xff]  ;;  %v29_v21 = vpack.c.bf16 %v21_v17, %v21_v17  ;;  %v44_v49 = vld [vmem:[%s1118_s1 + $0x38] sm:$0xff]  ;;  %v826_v52 = vld [vmem:[%s1120_s3 + $0x30] sm:$0xff]  }
  0x13   :  { %v34_v12 = vpack.c.bf16 %v26_v7, %v26_v7  ;;  %v821_v27 = vld [vmem:[%s1120_s3 + $0x8] sm:$0xff]   ;;  %v25_v53 = vld [vmem:[%s1119_s0 + $0x20] sm:$0xff]  ;;  %v52_v56 = vld [vmem:[%s1118_s1 + $0x78] sm:$0xff] }
  0x14   :  { %460 = vmatprep.mubr.bf16.mxu1 %v30_v4  ;;  %v33_v57 = vpack.c.bf16 %v25_v53, %v25_v53  ;;  %v56_v61 = vld [vmem:[%s1118_s1 + $0x98] sm:$0xff] }
  0x15   :  { %v64_v1 = vld [vmem:[%s1118_s1 + $0xd8] sm:$0xff] }
  0x16   :  { %473 = vmatpush1.bf16.xpose.msra.mxu0 %v724_v22  ;;  %433 = vmatpush1.bf16.xpose.msra.mxu1 %v722_v34  ;;  %v820_v22 = vld [vmem:[%s1120_s3] sm:$0xff]   ;;  %v83_v34 = vld [vmem:[%s1118_s1 + $0x170] sm:$0xff]  ;;  %v68_v2 = vld [vmem:[%s1118_s1 + $0xf8] sm:$0xff] }
  0x17   :  { %474 = vmatprep.subr.bf16.mxu0 %v733_v23  ;;  %434 = vmatprep.subr.bf16.mxu1 %v731_v35  ;;  %v63_v23 = vld [vmem:[%s1118_s1 + $0xd0] sm:$0xff]  ;;  %v742_v35 = vcombine.low %v71_v28, %v75_v29  ;;  %v751_v36 = vcombine.high %v79_v33, %v83_v34  ;;  %v750_v40 = vcombine.low %v79_v33, %v83_v34  ;;  %v72_v5 = vld [vmem:[%s1118_s1 + $0x118] sm:$0xff] }
  0x18   :  { %v735_v26 = vcombine.high %v63_v23, %v67_v24  ;;  %v737_v4 = vcombine.high %v64_v1, %v68_v2  ;;  %v736_v7 = vcombine.low %v64_v1, %v68_v2  ;;  %v80_v9 = vld [vmem:[%s1118_s1 + $0x158] sm:$0xff] }
  0x19   :  { %v92_v15 = vld [vmem:[%s1118_s1 + $0x1b8] sm:$0xff] }
  0x1e   :  { %475 = vmatpush1.bf16.xpose.msra.mxu0 %v732_v30  ;;  %435 = vmatpush1.bf16.xpose.msra.mxu1 %v730_v42  ;;  %v734_v30 = vcombine.low %v63_v23, %v67_v24  ;;  %v824_v42 = vld [vmem:[%s1120_s3 + $0x20] sm:$0xff]   ;;  %v27_v24 = vld [vmem:[%s1119_s0 + $0x30] sm:$0xff] }
  0x1f   :  { %476 = vmatprep.subr.bf16.mxu0 %v741_v31  ;;  %436 = vmatprep.subr.bf16.mxu1 %v739_v43  ;;  %v743_v31 = vcombine.high %v71_v28, %v75_v29  ;;  %v95_v43 = vld [vmem:[%s1118_s1 + $0x1d0] sm:$0xff] }
  0x26   :  { %477 = vmatpush1.bf16.xpose.msra.mxu0 %v740_v38  ;;  %437 = vmatpush1.bf16.xpose.msra.mxu1 %v738_v50  ;;  %v87_v38 = vld [vmem:[%s1118_s1 + $0x190] sm:$0xff]  ;;  %v766_v50 = vcombine.low %v95_v43, %v99_v44 }
  0x27   :  { %478 = vmatprep.subr.bf16.mxu0 %v749_v39  ;;  %438 = vmatprep.subr.bf16.mxu1 %v747_v51  ;;  %v91_v39 = vld [vmem:[%s1118_s1 + $0x1b0] sm:$0xff]  ;;  %v713_v51 = vcombine.high %v40_v48, %v44_v49 }
  0x28   :  { %v759_v41 = vcombine.high %v87_v38, %v91_v39  ;;  %v758_v45 = vcombine.low %v87_v38, %v91_v39 }
  0x2e   :  { %479 = vmatpush1.bf16.xpose.msra.mxu0 %v748_v46  ;;  %439 = vmatpush1.bf16.xpose.msra.mxu1 %v746_v58  ;;  %v767_v46 = vcombine.high %v95_v43, %v99_v44  ;;  %v712_v58 = vcombine.low %v40_v48, %v44_v49 }
  0x2f   :  { %480 = vmatprep.subr.bf16.mxu0 %v757_v47  ;;  %440 = vmatprep.subr.bf16.mxu1 %v755_v59  ;;  %v825_v47 = vld [vmem:[%s1120_s3 + $0x28] sm:$0xff]  }
  0x36   :  { %481 = vmatpush1.bf16.xpose.msra.mxu0 %v756_v54  ;;  %441 = vmatpush1.bf16.xpose.msra.mxu1 %v754_v3  ;;  %v28_v54 = vld [vmem:[%s1119_s0 + $0x38] sm:$0xff] }
  0x37   :  { %482 = vmatprep.subr.bf16.mxu0 %v765_v55  ;;  %442 = vmatprep.subr.bf16.mxu1 %v763_v6  ;;  %v48_v55 = vld [vmem:[%s1118_s1 + $0x58] sm:$0xff]  ;;  %v36_v59 = vpack.c.bf16 %v28_v54, %v28_v54 }
  0x38   :  { %v721_v60 = vcombine.high %v48_v55, %v52_v56  ;;  %v76_v6 = vld [vmem:[%s1118_s1 + $0x138] sm:$0xff] }
  0x39   :  { %v745_v8 = vcombine.high %v72_v5, %v76_v6 }
  0x3e   :  { %483 = vmatpush1.bf16.xpose.msra.mxu0 %v764_v62  ;;  %443 = vmatpush1.bf16.xpose.msra.mxu1 %v762_v14  ;;  %v60_v62 = vld [vmem:[%s1118_s1 + $0xb8] sm:$0xff] }
  0x3f   :  { %508 = vmatprep.subr.bf16.mxu0 %v711_v63  ;;  %788 = vmatprep.subr.bf16.mxu1 %v828_v19  ;;  %v720_v63 = vcombine.low %v48_v55, %v52_v56  ;;  %v729_v0 = vcombine.high %v56_v61, %v60_v62  ;;  %v728_v3 = vcombine.low %v56_v61, %v60_v62  ;;  %v88_v14 = vld [vmem:[%s1118_s1 + $0x198] sm:$0xff] }
  0x40   :  { %v761_v17 = vcombine.high %v88_v14, %v92_v15 }
  0x45   :  { %501 = vmatmul.mubr.bf16.vlgmr.msra.gmra.mrb[0].mxu0 %v31_v10  ;;  %461 = vmatmul.mubr.bf16.vlgmr.msra.gmra.mrb[0].mxu1 %v29_v21  ;;  %v84_v10 = vld [vmem:[%s1118_s1 + $0x178] sm:$0xff]  ;;  %v760_v21 = vcombine.low %v88_v14, %v92_v15 }
  0x46   :  { %509 = vmatpush1.bf16.xpose.msra.mxu0 %v710_v11  ;;  %540 = vmatprep.mubr.bf16.mxu0 %v34_v12  ;;  %v744_v11 = vcombine.low %v72_v5, %v76_v6  ;;  %v753_v12 = vcombine.high %v80_v9, %v84_v10  ;;  %v752_v16 = vcombine.low %v80_v9, %v84_v10 }
  0x47   :  { %510 = vmatprep.subr.bf16.mxu0 %v719_v13  ;;  %789 = vmatpush3.bf16.xpose.msra.mxu1 %v820_v22  ;;  %v827_v13 = vld [vmem:[%s1120_s3 + $0x38] sm:$0xff]  }
  0x48   :  { %790 = vmatprep.subr.bf16.mxu1 %v828_v19  ;;  %804 = vmatprep.mubr.msk.bf16.mxu1 %vm829_vm0, %v828_v19 }
  0x4e   :  { %511 = vmatpush1.bf16.xpose.msra.mxu0 %v718_v18  ;;  %v96_v18 = vld [vmem:[%s1118_s1 + $0x1d8] sm:$0xff] }
  0x4f   :  { %512 = vmatprep.subr.bf16.mxu0 %v727_v20  ;;  %791 = vmatpush3.bf16.xpose.msra.mxu1 %v821_v27  ;;  %v100_v20 = vld [vmem:[%s1118_s1 + $0x1f8] sm:$0xff] }
  0x50   :  { %792 = vmatprep.subr.bf16.mxu1 %v828_v19  ;;  %v769_v22 = vcombine.high %v96_v18, %v100_v20  ;;  %v768_v23 = vcombine.low %v96_v18, %v100_v20 }
  0x56   :  { %513 = vmatpush1.bf16.xpose.msra.mxu0 %v726_v25  ;;  %v35_v25 = vpack.c.bf16 %v27_v24, %v27_v24 }
  0x57   :  { %514 = vmatprep.subr.bf16.mxu0 %v735_v26  ;;  %793 = vmatpush3.bf16.xpose.msra.mxu1 %v822_v32 }
  0x58   :  { %794 = vmatprep.subr.bf16.mxu1 %v828_v19 }
  0x5e   :  { %515 = vmatpush1.bf16.xpose.msra.mxu0 %v734_v30  ;;  %v705_v30 = vld [vmem:[%s1121_s2] ss:$0 sm:$0xff] }
  0x5f   :  { %516 = vmatprep.subr.bf16.mxu0 %v743_v31  ;;  %795 = vmatpush3.bf16.xpose.msra.mxu1 %v823_v37 }
  0x60   :  { %796 = vmatprep.subr.bf16.mxu1 %v828_v19 }
  0x66   :  { %517 = vmatpush1.bf16.xpose.msra.mxu0 %v742_v35 }
  0x67   :  { %518 = vmatprep.subr.bf16.mxu0 %v751_v36  ;;  %797 = vmatpush3.bf16.xpose.msra.mxu1 %v824_v42 }
  0x68   :  { %798 = vmatprep.subr.bf16.mxu1 %v828_v19 }
  0x6e   :  { %519 = vmatpush1.bf16.xpose.msra.mxu0 %v750_v40 }
  0x6f   :  { %520 = vmatprep.subr.bf16.mxu0 %v759_v41  ;;  %799 = vmatpush3.bf16.xpose.msra.mxu1 %v825_v47 }
  0x70   :  { %800 = vmatprep.subr.bf16.mxu1 %v828_v19 }
  0x76   :  { %521 = vmatpush1.bf16.xpose.msra.mxu0 %v758_v45 }
  0x77   :  { %522 = vmatprep.subr.bf16.mxu0 %v767_v46  ;;  %801 = vmatpush3.bf16.xpose.msra.mxu1 %v826_v52 }
  0x78   :  { %802 = vmatprep.subr.bf16.mxu1 %v828_v19  ;;  %v770_v19 = vld [vmem:[%s1122_s4] ss:$0 sm:$0xff] }
  0x7e   :  { %523 = vmatpush1.bf16.xpose.msra.mxu0 %v766_v50 }
  0x7f   :  { %548 = vmatprep.subr.bf16.mxu0 %v713_v51  ;;  %803 = vmatpush3.bf16.xpose.msra.mxu1 %v827_v13 }
  0x85   :  { %541 = vmatmul.mubr.bf16.vlgmr.msra.gmra.mrb[0].mxu0 %v33_v57 }
  0x86   :  { %549 = vmatpush1.bf16.xpose.msra.mxu0 %v712_v58  ;;  %580 = vmatprep.mubr.bf16.mxu0 %v36_v59 }
  0x87   :  { %550 = vmatprep.subr.bf16.mxu0 %v721_v60 }
  0x8e   :  { %551 = vmatpush1.bf16.xpose.msra.mxu0 %v720_v63 }
  0x8f   :  { %552 = vmatprep.subr.bf16.mxu0 %v729_v0 }
  0x96   :  { %553 = vmatpush1.bf16.xpose.msra.mxu0 %v728_v3 }
  0x97   :  { %554 = vmatprep.subr.bf16.mxu0 %v737_v4 }
  0x9e   :  { %555 = vmatpush1.bf16.xpose.msra.mxu0 %v736_v7 }
  0x9f   :  { %556 = vmatprep.subr.bf16.mxu0 %v745_v8 }
  0xa6   :  { %557 = vmatpush1.bf16.xpose.msra.mxu0 %v744_v11 }
  0xa7   :  { %558 = vmatprep.subr.bf16.mxu0 %v753_v12 }
  0xae   :  { %559 = vmatpush1.bf16.xpose.msra.mxu0 %v752_v16 }
  0xaf   :  { %560 = vmatprep.subr.bf16.mxu0 %v761_v17 }
  0xb6   :  { %561 = vmatpush1.bf16.xpose.msra.mxu0 %v760_v21 }
  0xb7   :  { %562 = vmatprep.subr.bf16.mxu0 %v769_v22 }
  0xbe   :  { %563 = vmatpush1.bf16.xpose.msra.mxu0 %v768_v23 }
  0xc5   :  { %581 = vmatmul.mubr.bf16.vlgmr.msra.gmra.mrb[0].mxu0 %v35_v25 }
 0x118   :  { %v462_v26 = vpop.f32.mrb[0].mxu1 }
 0x119   :  { %v464_v27 = vpop.f32.mrb[1].mxu1  ;;  %v463_v31 = vadd.f32 %v705_v30, %v462_v26 }
 0x11a   :  { %v465_v28 = vpop.f32.mrb[2].mxu1 }
 0x11b   :  { %v466_v29 = vpop.f32.mrb[3].mxu1 }
 0x198   :  { %v582_v32 = vpop.f32.mrb[0].mxu0 }
 0x199   :  { %v809_v33 = vadd.f32 %v582_v32, %v463_v31  ;;  %v584_v34 = vpop.f32.mrb[1].mxu0 }
 0x19a   :  { %v585_v35 = vpop.f32.mrb[2].mxu0 }
 0x19b   :  { %v588_v36 = vpack.c.bf16 %v809_v33, %v809_v33  ;;  %v586_v37 = vpop.f32.mrb[3].mxu0 }
 0x19d   :  { %805 = vmatmul.mubr.bf16.vlgmr.msra.gmra.mrb[4].mxu1 %v588_v36 }
 0x270   :  { %v694_v38 = vpop.f32.mrb[4].mxu1 }
 0x271   :  { %v695_v39 = vadd.f32 %v770_v19, %v694_v38  ;;  %v806_v40 = vpop.f32.mrb[5].mxu1 }
 0x272   :  { %v697_v41 = vpop.f32.mrb[6].mxu1 }
 0x273   :  { %700 = vst [vmem:[%s1123_s5] sm:$0xff] %v695_v39  ;;  %v807_v42 = vpop.f32.mrb[7].mxu1 }

</bundles_post_ra>
